<compile_context>
chip_gen: v7x
topology: tpu7x:2x2x1
jax: 0.10.0
libtpu: 0.0.40
codegen_flags: <defaults>
</compile_context>

<pallas_src>
import functools

import jax
import jax.numpy as jnp
from jax.experimental import pallas as pl
from jax.experimental.pallas import tpu as pltpu

_LANE = 128
_MAX_TILE = 16384        # amortizes ~0.35us per-step overhead to <~2%
_MIN_AUTO_TILE = 4096
_TARGET_STEPS = 8        # keep >= 2-4 steps per TensorCore on 2-TC chips (v7x)


def _round_up(v, m):
    return ((v + m - 1) // m) * m


def _mlp_kernel(n_layers, x_ref, *refs):
    """Forward over one batch tile, batch on the lane axis throughout.

    refs = (w0, b0, ..., w_last_col, b_last, o_ref)
      x_ref:      [state_dim, batch_tile]   (compute dtype, lane-dense)
      w_ref:      [out_f, in_f]             (compute dtype, PyTorch layout)
      b_ref:      [out_f, 1]                (f32)
      w_last_col: [H, 1]                    (f32, final layer as a column)
      b_last:     [1, 1]                    (f32)
      o_ref:      [1, batch_tile]           (f32, lane-dense store)
    """
    o_ref = refs[-1]
    params = refs[:-1]

    # Layer 0 (MXU): w0 [H, S] @ x [S, bt] -> h [H, bt], f32 accumulation.
    w0 = params[0][...]
    b0 = params[1][...]
    h = jnp.dot(w0, x_ref[...], preferred_element_type=jnp.float32)
    h = jnp.maximum(h + b0, 0.0)

    # Hidden layers 1 .. n_layers-2 (MXU): activations stay [H, bt].
    for layer in range(1, n_layers - 1):
        w = params[2 * layer][...]
        b = params[2 * layer + 1][...]
        h = jnp.dot(w, h.astype(w.dtype), preferred_element_type=jnp.float32)
        h = jnp.maximum(h + b, 0.0)

    # Final Linear(H -> 1) + ReLU on the VPU/XLU instead of the MXU:
    # broadcast-multiply by the weight column, cross-sublane reduce over H.
    w_last = params[2 * (n_layers - 1)][...]       # [H, 1] f32
    b_last = params[2 * (n_layers - 1) + 1][...]   # [1, 1] f32
    out = jnp.sum(h * w_last, axis=0, keepdims=True)    # [1, bt]
    o_ref[...] = jnp.maximum(out + b_last, 0.0).astype(o_ref.dtype)


def value_relu_mlp(x, weights, biases, *, batch_tile=None,
                   compute_dtype=jnp.bfloat16, out_dtype=jnp.float32):
    """ValueReluMLP forward with a single Pallas kernel.

    x:       [B, state_dim]
    weights: list of [out_features, in_features] (PyTorch nn.Linear layout)
    biases:  list of [out_features]
    returns: [B, 1]

    Note: with compute_dtype=bfloat16 (default) the streamed operands (x,
    hidden weights, inter-layer activations) are bf16 with f32 accumulation,
    which changes numerics slightly vs the f32 PyTorch reference.
    """
    B, state_dim = x.shape
    n_layers = len(weights)
    assert len(biases) == n_layers and n_layers >= 2
    assert weights[-1].shape[0] == 1
    hidden = weights[0].shape[0]

    # ---- batch tile selection (lane-aligned) ------------------------------
    b_up = _round_up(B, _LANE)
    if batch_tile is None:
        bt = max(_MIN_AUTO_TILE, _round_up(pl.cdiv(b_up, _TARGET_STEPS), _LANE))
        bt = min(bt, _MAX_TILE, b_up)
    else:
        bt = min(max(_LANE, _round_up(int(batch_tile), _LANE)), b_up)
    b_pad = _round_up(B, bt)
    grid = (b_pad // bt,)

    # ---- x: transpose + cast + pad (fused by XLA), lane-dense [S, B] ------
    xp = x.astype(compute_dtype).T
    if b_pad != B:
        xp = jnp.pad(xp, ((0, 0), (0, b_pad - B)))

    # ---- kernel args + specs ----------------------------------------------
    args = [xp]
    in_specs = [pl.BlockSpec((state_dim, bt), lambda i: (0, i))]
    for layer, (w, b) in enumerate(zip(weights, biases)):
        out_f, in_f = w.shape
        if layer == n_layers - 1:
            # Final layer as an f32 column vector for the VPU/XLU path.
            args.append(w.reshape(in_f, 1).astype(jnp.float32))
            args.append(b.reshape(1, 1).astype(jnp.float32))
            in_specs.append(pl.BlockSpec((in_f, 1), lambda i: (0, 0)))
            in_specs.append(pl.BlockSpec((1, 1), lambda i: (0, 0)))
        else:
            args.append(w.astype(compute_dtype))
            args.append(b.reshape(out_f, 1).astype(jnp.float32))
            # Tiny resident constants: whole-array, constant-index blocks.
            in_specs.append(pl.BlockSpec((out_f, in_f), lambda i: (0, 0)))
            in_specs.append(pl.BlockSpec((out_f, 1), lambda i: (0, 0)))

    # ---- VMEM budget (double-buffered x + output, resident params,
    #      f32 intermediates headroom), capped below v7x's 64 MiB physical ---
    cbytes = jnp.dtype(compute_dtype).itemsize
    vmem_est = (2 * state_dim * bt * cbytes          # x stream (2 buffers)
                + 2 * bt * 4                          # output stream (2 buffers)
                + sum(w.size * cbytes + b.size * 4
                      for w, b in zip(weights, biases))
                + 3 * hidden * bt * 4)                # live f32 intermediates
    vmem_limit = int(min(48 * 1024 * 1024, max(16 * 1024 * 1024, 2 * vmem_est)))

    # ---- scheduling hint ----------------------------------------------------
    flops = sum(2 * b_pad * w.shape[0] * w.shape[1] for w in weights)
    bytes_accessed = (xp.size * cbytes + b_pad * 4
                      + sum(w.size * cbytes + b.size * 4
                            for w, b in zip(weights, biases)))
    cost = pl.CostEstimate(flops=int(flops), transcendentals=0,
                           bytes_accessed=int(bytes_accessed))

    out_t = pl.pallas_call(
        functools.partial(_mlp_kernel, n_layers),
        out_shape=jax.ShapeDtypeStruct((1, b_pad), jnp.float32),
        grid_spec=pltpu.PrefetchScalarGridSpec(
            num_scalar_prefetch=0,
            grid=grid,
            in_specs=in_specs,
            out_specs=pl.BlockSpec((1, bt), lambda i: (0, i)),
        ),
        compiler_params=pltpu.CompilerParams(
            dimension_semantics=("parallel",),
            vmem_limit_bytes=vmem_limit,
        ),
        cost_estimate=cost,
    )(*args)

    # [1, b_pad] -> [B, 1]
    return out_t[0, :B].reshape(B, 1).astype(out_dtype)


def init_params(key, state_dim, hidden_dim, depth):
    """torch.nn.Linear-style init: U(-1/sqrt(fan_in), 1/sqrt(fan_in)).
    Weights in PyTorch layout [out_features, in_features]."""
    dims = [state_dim] + [hidden_dim] * depth + [1]
    weights, biases = [], []
    for din, dout in zip(dims[:-1], dims[1:]):
        key, kw, kb = jax.random.split(key, 3)
        bound = 1.0 / jnp.sqrt(jnp.float32(din))
        weights.append(jax.random.uniform(kw, (dout, din), jnp.float32, -bound, bound))
        biases.append(jax.random.uniform(kb, (dout,), jnp.float32, -bound, bound))
    return weights, biases


def reference_forward(x, weights, biases):
    h = x
    for w, b in zip(weights, biases):
        h = jnp.maximum(h @ w.T + b, 0.0)
    return h


if __name__ == "__main__":
    # Module constructor args: state_dim=16, v_hidden_width=32, v_depth=2.
    # B=200 is ragged on purpose to exercise the padding + multi-tile grid path.
    B, state_dim, hidden_dim, depth = 200, 16, 32, 2

    key = jax.random.PRNGKey(0)
    key, kx = jax.random.split(key)
    x = jax.random.normal(kx, (B, state_dim), jnp.float32)
    weights, biases = init_params(key, state_dim, hidden_dim, depth)

    ref = reference_forward(x, weights, biases)

    # f32 path with a small explicit tile -> multi-step, padded, parallel grid.
    out_f32 = jax.block_until_ready(
        value_relu_mlp(x, weights, biases, batch_tile=128,
                       compute_dtype=jnp.float32))
    assert out_f32.shape == (B, 1)
    assert jnp.allclose(out_f32, ref, atol=1e-3, rtol=1e-3), (out_f32, ref)

    # Default path: bf16 streamed operands, auto tile selection, f32 accumulation.
    out_bf16 = jax.block_until_ready(value_relu_mlp(x, weights, biases))
    assert out_bf16.shape == (B, 1)
    assert jnp.allclose(out_bf16, ref, atol=5e-2, rtol=5e-2), (out_bf16, ref)

    print("KERNEL_OK")
</pallas_src>

<mosaic_0001>
module attributes {stable_mosaic.version = 11 : i64} {
  func.func @_mlp_kernel(%arg0: i32, %arg1: memref<16x128xf32, #tpu.memory_space<vmem>>, %arg2: memref<32x16xf32, #tpu.memory_space<vmem>>, %arg3: memref<32x1xf32, #tpu.memory_space<vmem>>, %arg4: memref<32x32xf32, #tpu.memory_space<vmem>>, %arg5: memref<32x1xf32, #tpu.memory_space<vmem>>, %arg6: memref<32x1xf32, #tpu.memory_space<vmem>>, %arg7: memref<1x1xf32, #tpu.memory_space<vmem>>, %arg8: memref<1x128xf32, #tpu.memory_space<vmem>>) attributes {dimension_semantics = [#tpu.dimension_semantics<parallel>], iteration_bounds = array<i64: 2>, scalar_prefetch = 0 : i64, scratch_operands = 0 : i64, tpu.core_type = #tpu.core_type<tc>, window_params = [{transform_indices = @transform_0, window_bounds = array<i64: 16, 128>}, {pipeline_mode = #tpu.pipeline_mode<synchronous>, transform_indices = @transform_1, window_bounds = array<i64: 32, 16>}, {pipeline_mode = #tpu.pipeline_mode<synchronous>, transform_indices = @transform_2, window_bounds = array<i64: 32, 1>}, {pipeline_mode = #tpu.pipeline_mode<synchronous>, transform_indices = @transform_3, window_bounds = array<i64: 32, 32>}, {pipeline_mode = #tpu.pipeline_mode<synchronous>, transform_indices = @transform_4, window_bounds = array<i64: 32, 1>}, {pipeline_mode = #tpu.pipeline_mode<synchronous>, transform_indices = @transform_5, window_bounds = array<i64: 32, 1>}, {pipeline_mode = #tpu.pipeline_mode<synchronous>, transform_indices = @transform_6, window_bounds = array<i64: 1, 1>}, {transform_indices = @transform_7, window_bounds = array<i64: 1, 128>}]} {
    %c0 = arith.constant 0 : index
    %c0_0 = arith.constant 0 : index
    %0 = vector.load %arg2[%c0, %c0_0] : memref<32x16xf32, #tpu.memory_space<vmem>>, vector<32x16xf32>
    %c0_1 = arith.constant 0 : index
    %c0_2 = arith.constant 0 : index
    %1 = vector.load %arg3[%c0_1, %c0_2] : memref<32x1xf32, #tpu.memory_space<vmem>>, vector<32x1xf32>
    %c0_3 = arith.constant 0 : index
    %c0_4 = arith.constant 0 : index
    %2 = vector.load %arg1[%c0_3, %c0_4] : memref<16x128xf32, #tpu.memory_space<vmem>>, vector<16x128xf32>
    %cst = arith.constant dense<0.000000e+00> : vector<32x128xf32>
    %3 = tpu.matmul %0, %2, %cst {dimension_numbers = #tpu.dot_dimension_numbers<[1], [0], [0], [1], [0, 0, 1, 1], [], []>} : vector<32x16xf32>, vector<16x128xf32>, vector<32x128xf32> -> vector<32x128xf32>
    %4 = vector.broadcast %1 : vector<32x1xf32> to vector<32x128xf32>
    %5 = arith.addf %3, %4 : vector<32x128xf32>
    %cst_5 = arith.constant 0.000000e+00 : f32
    %6 = vector.broadcast %cst_5 : f32 to vector<32x128xf32>
    %7 = arith.maximumf %5, %6 : vector<32x128xf32>
    %c0_6 = arith.constant 0 : index
    %c0_7 = arith.constant 0 : index
    %8 = vector.load %arg4[%c0_6, %c0_7] : memref<32x32xf32, #tpu.memory_space<vmem>>, vector<32x32xf32>
    %c0_8 = arith.constant 0 : index
    %c0_9 = arith.constant 0 : index
    %9 = vector.load %arg5[%c0_8, %c0_9] : memref<32x1xf32, #tpu.memory_space<vmem>>, vector<32x1xf32>
    %cst_10 = arith.constant dense<0.000000e+00> : vector<32x128xf32>
    %10 = tpu.matmul %8, %7, %cst_10 {dimension_numbers = #tpu.dot_dimension_numbers<[1], [0], [0], [1], [0, 0, 1, 1], [], []>} : vector<32x32xf32>, vector<32x128xf32>, vector<32x128xf32> -> vector<32x128xf32>
    %11 = vector.broadcast %9 : vector<32x1xf32> to vector<32x128xf32>
    %12 = arith.addf %10, %11 : vector<32x128xf32>
    %cst_11 = arith.constant 0.000000e+00 : f32
    %13 = vector.broadcast %cst_11 : f32 to vector<32x128xf32>
    %14 = arith.maximumf %12, %13 : vector<32x128xf32>
    %c0_12 = arith.constant 0 : index
    %c0_13 = arith.constant 0 : index
    %15 = vector.load %arg6[%c0_12, %c0_13] : memref<32x1xf32, #tpu.memory_space<vmem>>, vector<32x1xf32>
    %c0_14 = arith.constant 0 : index
    %c0_15 = arith.constant 0 : index
    %16 = vector.load %arg7[%c0_14, %c0_15] : memref<1x1xf32, #tpu.memory_space<vmem>>, vector<1x1xf32>
    %17 = vector.broadcast %15 : vector<32x1xf32> to vector<32x128xf32>
    %18 = arith.mulf %14, %17 : vector<32x128xf32>
    %cst_16 = arith.constant dense<0.000000e+00> : vector<128xf32>
    %19 = vector.multi_reduction <add>, %18, %cst_16 [0] : vector<32x128xf32> to vector<128xf32>
    %20 = vector.shape_cast %19 : vector<128xf32> to vector<1x128xf32>
    %21 = vector.broadcast %16 : vector<1x1xf32> to vector<1x128xf32>
    %22 = arith.addf %20, %21 : vector<1x128xf32>
    %cst_17 = arith.constant 0.000000e+00 : f32
    %23 = vector.broadcast %cst_17 : f32 to vector<1x128xf32>
    %24 = arith.maximumf %22, %23 : vector<1x128xf32>
    %c0_18 = arith.constant 0 : index
    %c0_19 = arith.constant 0 : index
    %25 = vector.load %arg8[%c0_18, %c0_19] : memref<1x128xf32, #tpu.memory_space<vmem>>, vector<1x128xf32>
    tpu.vector_store %arg8[%c0_18, %c0_19], %24 {strides = array<i32>} : memref<1x128xf32, #tpu.memory_space<vmem>>, vector<1x128xf32>,
    return
  }
  func.func @transform_0(%arg0: i32) -> (i32, i32) {
    %c0_i32 = arith.constant 0 : i32
    %c0_i32_0 = arith.constant 0 : i32
    return %c0_i32, %arg0 : i32, i32
  }
  func.func @transform_1(%arg0: i32) -> (i32, i32) {
    %c0_i32 = arith.constant 0 : i32
    %c0_i32_0 = arith.constant 0 : i32
    %c0_i32_1 = arith.constant 0 : i32
    return %c0_i32, %c0_i32_0 : i32, i32
  }
  func.func @transform_2(%arg0: i32) -> (i32, i32) {
    %c0_i32 = arith.constant 0 : i32
    %c0_i32_0 = arith.constant 0 : i32
    %c0_i32_1 = arith.constant 0 : i32
    return %c0_i32, %c0_i32_0 : i32, i32
  }
  func.func @transform_3(%arg0: i32) -> (i32, i32) {
    %c0_i32 = arith.constant 0 : i32
    %c0_i32_0 = arith.constant 0 : i32
    %c0_i32_1 = arith.constant 0 : i32
    return %c0_i32, %c0_i32_0 : i32, i32
  }
  func.func @transform_4(%arg0: i32) -> (i32, i32) {
    %c0_i32 = arith.constant 0 : i32
    %c0_i32_0 = arith.constant 0 : i32
    %c0_i32_1 = arith.constant 0 : i32
    return %c0_i32, %c0_i32_0 : i32, i32
  }
  func.func @transform_5(%arg0: i32) -> (i32, i32) {
    %c0_i32 = arith.constant 0 : i32
    %c0_i32_0 = arith.constant 0 : i32
    %c0_i32_1 = arith.constant 0 : i32
    return %c0_i32, %c0_i32_0 : i32, i32
  }
  func.func @transform_6(%arg0: i32) -> (i32, i32) {
    %c0_i32 = arith.constant 0 : i32
    %c0_i32_0 = arith.constant 0 : i32
    %c0_i32_1 = arith.constant 0 : i32
    return %c0_i32, %c0_i32_0 : i32, i32
  }
  func.func @transform_7(%arg0: i32) -> (i32, i32) {
    %c0_i32 = arith.constant 0 : i32
    %c0_i32_0 = arith.constant 0 : i32
    return %c0_i32, %arg0 : i32, i32
  }
}

</mosaic_0001>

<bundles_post_ra>
// kernel: tpu_custom_call.1
= control target key start
LH: loop header
LB: loop body
LE: loop exit
PB: predicated region body
PF: predicated region fallthrough
CT: control target
= control target key end

     0   :  { %s1099_s0 = inlined_call_operand.vmem [shape: f32[16,256], index: 0, kind: input, shape index: {}]   ;;  %s1100_s1 = inlined_call_operand.vmem [shape: f32[32,16], index: 1, kind: input, shape index: {}]   ;;  %s1101_s2 = inlined_call_operand.vmem [shape: f32[32,1], index: 2, kind: input, shape index: {}]   ;;  %s1102_s3 = inlined_call_operand.vmem [shape: f32[32,32], index: 3, kind: input, shape index: {}]   ;;  %s1103_s4 = inlined_call_operand.vmem [shape: f32[32,1], index: 4, kind: input, shape index: {}]   ;;  %s1104_s5 = inlined_call_operand.vmem [shape: f32[32,1], index: 5, kind: input, shape index: {}]   ;;  %s1105_s6 = inlined_call_operand.<no memory space> [shape: f32[1,1], index: 6, kind: input, shape index: {}]   ;;  %s1106_s7 = inlined_call_operand.hbm [shape: f32[1,256], index: 7, kind: output, shape index: {}]  }
   0x1   :  { %v12_v0 = vstv %s1105_s6 }
   0x2   :  { %13 = vst [vmem:[#allocation2] sm:$0x1] %v12_v0 }
   0x3   :  { %14 = vsyncpa [#allocation5], 0 }
   0x4   :  { %16 = vsyncpa [#allocation5 + $0x1], 0  ;;  %s921_s26 = smov 0   ;;  %s923_s27 = smov 0  }
   0x5   :  { %s925_s28 = smov 0   ;;  %s927_s29 = smov 0  }
   0x6 LB: > { %s701_s6 = sadd.s32 4294967295, %s874_s29   ;;  %s702_s30 = sadd.s32 4294967294, %s874_s29   ;;  %s874_s29 = sphi %s927_s29, %s1112_s29   ;;  %s870_s28 = sphi %s925_s28, %s1111_s28   ;;  %s866_s27 = sphi %s923_s27, %s1110_s27   ;;  %s862_s26 = sphi %s921_s26, %s1109_s26  }
   0x7   : > { %s944_s8 = sadd.s32 1, %s874_s29   ;;  %s29_s9 = sadd.s32 1, %s870_s28 }
   0x8   : > { %s26_s10 = ssub.s32 %s874_s29, %s944_s8  ;;  %p36_p0 = scmp.ne.s32.totalorder %s870_s28, %s866_s27 }
   0x9   : > { %p27_p1 = scmp.eq.s32.totalorder %s26_s10, 0  ;;  %p37_p2 = scmp.eq.s32.totalorder %s874_s29, 0 }
   0xa   : > { %p192_p3 = scmp.eq.s32.totalorder %s701_s6, 1  ;;  %p197_p4 = scmp.ne.s32.totalorder %s866_s27, %s862_s26 }
   0xb   : > { %s957_s11 = scalar_select %p27_p1, %s870_s28, %s29_s9  }
   0xc   : > { %p38_p5 = por %p37_p2, %p36_p0  ;;  %p959_p6 = por %p192_p3, %p36_p0 }
   0xd   : > { %p198_p7 = scmp.eq.s32.totalorder %s702_s30, 1  ;;  %p704_p9 = scmp.ge.s32.totalorder %s874_s29, 2 }
   0xf   : > { %p963_p8 = por %p198_p7, %p197_p4  ;;  %232 = sbr.rel (%p704_p9) target bundleno = 29 (0x1d), region = 40 }
  0x16   : > { %235 = sbr.rel (!%p38_p5) target bundleno = 29 (0x1d), region = 44  ;;  %s237_s14 = sand.u32 (%p38_p5), 1, %s870_s28  }
  0x17   : > { %s706_s15 = sshll.u32 (%p38_p5), %s874_s29, 3  ;;  %s705_s16 = sshll.u32 (%p38_p5), %s237_s14, 4 }
  0x18   : > { %s241_s19 = scalar_lea.vmem (%p38_p5), %s1099_s0, %s706_s15  ;;  %s239_s20 = scalar_lea.vmem (%p38_p5), [#allocation3], %s705_s16 }
  0x19   : > { %v271_v1 = vld [vmem:[%s241_s19] sm:$0xff] (%p38_p5)  ;;  %v273_v2 = vld [vmem:[%s241_s19 + $0x10] sm:$0xff] (%p38_p5) }
  0x1a   : > { %272 = vst [vmem:[%s239_s20] sm:$0xff] (%p38_p5), %v271_v1  ;;  %274 = vst [vmem:[%s239_s20 + $0x8] sm:$0xff] (%p38_p5), %v273_v2 }
  0x1d PF: > { %p707_p10 = scmp.ge.s32.totalorder %s874_s29, 1  ;;  %p279_p11 = scmp.lt.s32.totalorder %s874_s29, 3 }
  0x1f   : > { %p280_p12 = pnand %p707_p10, %p279_p11 }
  0x20   : > { %s978_s21 = sand.u32 (!%p280_p12), 1, %s866_s27   ;;  %v316_v3 = vld [vmem:[%s1100_s1] sm:$0xff] (!%p280_p12)  ;;  %vm346_vm0 = vcmask (!%p280_p12), 130048   ;;  %v876_v4 = vmov (!%p280_p12), 0   ;;  %v322_v6 = vld [vmem:[%s1101_s2 + $0x10] sm:$0xff] (!%p280_p12)  ;;  %v321_v9 = vld [vmem:[%s1101_s2 + $0x8] sm:$0xff] (!%p280_p12) }
  0x21   : > { %283 = sbr.rel (%p280_p12) target bundleno = 526 (0x20e), region = 82  ;;  %s708_s24 = sshll.u32 (!%p280_p12), %s978_s21, 4  ;;  %738 = vmatprep.mubr.msk.f32.mxu0 (!%p280_p12), %vm346_vm0, %v316_v3  ;;  %810 = vset.pattern.permute.xlu0 (!%p280_p12), %v876_v4  ;;  %v320_v5 = vld [vmem:[%s1101_s2] sm:$0xff] (!%p280_p12)  ;;  %v323_v11 = vld [vmem:[%s1101_s2 + $0x18] sm:$0xff] (!%p280_p12)  ;;  %v317_v12 = vld [vmem:[%s1100_s1 + $0x8] sm:$0xff] (!%p280_p12)  ;;  %vm476_vm1 = vcmask (!%p280_p12), 261120  }
  0x22   : > { %328 = vperm.xlu0 (!%p280_p12), %810, %v320_v5   ;;  %811 = vset.pattern.permute.xlu1 (!%p280_p12), %v876_v4  ;;  %s288_s14 = scalar_lea.vmem (!%p280_p12), [#allocation3], %s708_s24  ;;  %v452_v13 = vld [vmem:[%s1103_s4] sm:$0xff] (!%p280_p12)  ;;  %v318_v14 = vld [vmem:[%s1100_s1 + $0x10] sm:$0xff] (!%p280_p12)  ;;  %v453_v15 = vld [vmem:[%s1103_s4 + $0x8] sm:$0xff] (!%p280_p12)  ;;  %s717_s22 = sshll.u32 (!%p280_p12), %s701_s6, 4 }
  0x23   : > { %v324_v7 = vld [vmem:[%s288_s14] sm:$0xff] (!%p280_p12)  ;;  %v325_v8 = vld [vmem:[%s288_s14 + $0x8] sm:$0xff] (!%p280_p12)  ;;  %338 = vperm.xlu1 (!%p280_p12), %811, %v322_v6   ;;  %s315_s23 = scalar_lea.vmem (!%p280_p12), [#allocation4], %s978_s21  ;;  %s1055_s9 = scalar_lea.hbm (!%p280_p12), %s1106_s7, %s717_s22 }
  0x24   : > { %v758_v10 = vpack.c.bf16 (!%p280_p12), %v325_v8, %v324_v7  ;;  %v319_v16 = vld [vmem:[%s1100_s1 + $0x18] sm:$0xff] (!%p280_p12)  ;;  %v454_v17 = vld [vmem:[%s1103_s4 + $0x10] sm:$0xff] (!%p280_p12)  ;;  %v578_v19 = vld [vmem:[%s1104_s5] sm:$0xff] (!%p280_p12)  ;;  %v621_v8 = vlaneseq (!%p280_p12)  ;;  %s641_s24 = sshll.u32 (!%p280_p12), %s315_s23, 4  ;;  %s629_s10 = scalar_lea.sflag (!%p280_p12), [#allocation5], %s978_s21  ;;  %s1057_s24 = int_to_ptr.vmem [resolvable:$true] %s641_s24 }
  0x25   : > { %v455_v18 = vld [vmem:[%s1103_s4 + $0x18] sm:$0xff] (!%p280_p12)  ;;  %v579_v20 = vld [vmem:[%s1104_s5 + $0x8] sm:$0xff] (!%p280_p12)  ;;  %v580_v21 = vld [vmem:[%s1104_s5 + $0x10] sm:$0xff] (!%p280_p12)  ;;  %s812_s14 = scalar_lea.vmem (!%p280_p12), %s1057_s24, 16  ;;  %s877_s6 = smov (!%p280_p12), [#allocation4]  }
  0x26   : > { %759 = vmatprep.subr.bf16.mxu0 (!%p280_p12), %v758_v10  ;;  %333 = vperm.xlu0 (!%p280_p12), %810, %v321_v9   ;;  %v581_v22 = vld [vmem:[%s1104_s5 + $0x18] sm:$0xff] (!%p280_p12)  ;;  %v582_v23 = vld [vmem:[#allocation2] sm:$0x1] (!%p280_p12)  ;;  %v449_v43 = vld [vmem:[%s1102_s3 + $0x8] sm:$0xff] (!%p280_p12)  ;;  %p813_p13 = scmp.ne.s32.totalorder (!%p280_p12), %s1057_s24, %s812_s14  ;;  %s816_s15 = sshll.u32 (!%p280_p12), %s877_s6, 4  ;;  %s817_s15 = int_to_ptr.vmem [resolvable:$false] %s816_s15 }
  0x27   : > { %761 = vmatpush3.bf16.msra.mxu0 (!%p280_p12), %v758_v10  ;;  %343 = vperm.xlu1 (!%p280_p12), %811, %v323_v11   ;;  %v448_v24 = vld [vmem:[%s1102_s3] sm:$0xff] (!%p280_p12)  ;;  %v450_v44 = vld [vmem:[%s1102_s3 + $0x10] sm:$0xff] (!%p280_p12)  ;;  %v451_v45 = vld [vmem:[%s1102_s3 + $0x18] sm:$0xff] (!%p280_p12)  ;;  %v622_v11 = vshrl.u32 (!%p280_p12), %v621_v8, 7  ;;  %s818_s16 = scalar_lea.vmem (!%p280_p12), %s817_s15, 32  ;;  %p819_p2 = scmp.lt.s32.totalorder (!%p280_p12), %s1057_s24, %s817_s15 }
  0x28   : > { %752 = vmatprep.mubr.msk.f32.mxu1 %vm476_vm1, %v448_v24  ;;  %p814_p0 = pnand %p813_p13, %p959_p6  ;;  %p820_p3 = scmp.lt.s32.totalorder %s818_s16, %s812_s14 }
  0x2a   : > { %739 = vmatmul.mubr.msk.f32.vlgmr.msra.gmra.mrb[0].mxu0 %vm346_vm0, %v317_v12  ;;  %458 = vperm.xlu0 %810, %v452_v13   ;;  %p815_p1 = pneg %p814_p0  ;;  %p821_p4 = por %p820_p3, %p819_p2 }
  0x2b   : > { %741 = vmatprep.mubr.msk.f32.mxu0 %vm346_vm0, %v318_v14  ;;  %463 = vperm.xlu1 %811, %v453_v15   ;;  %v623_v14 = vsub.s32 0, %v622_v11 }
  0x2c   : > { %p822_p5 = pnand %p821_p4, %p815_p1 }
  0x2e   : > { %742 = vmatmul.mubr.msk.f32.gmra.mrb[2].mxu0 %vm346_vm0, %v319_v16  ;;  %468 = vperm.xlu0 %810, %v454_v17  }
  0x2f   : > { %473 = vperm.xlu1 %811, %v455_v18  }
  0x32   : > { %585 = vperm.xlu0 %810, %v578_v19  }
  0x33   : > { %590 = vperm.xlu1 %811, %v579_v20  }
  0x36   : > { %595 = vperm.xlu0 %810, %v580_v21  }
  0x37   : > { %600 = vperm.xlu1 %811, %v581_v22  }
  0x3a   : > { %618 = vperm.xlu0 %810, %v582_v23  }
  0xa1   : > { %v329_v25 = vpop.permute.xlu0 %328 }
  0xa2   : > { %v339_v26 = vpop.permute.xlu1 %338 }
  0xa5   : > { %v334_v27 = vpop.permute.xlu0 %333 }
  0xa6   : > { %v344_v33 = vpop.permute.xlu1 %343 }
  0xa9   : > { %v459_v46 = vpop.permute.xlu0 %458 }
  0xaa   : > { %v464_v47 = vpop.permute.xlu1 %463 }
  0xad   : > { %v469_v48 = vpop.permute.xlu0 %468 }
  0xae   : > { %v474_v49 = vpop.permute.xlu1 %473 }
  0xb1   : > { %v586_v54 = vpop.permute.xlu0 %585 }
  0xb2   : > { %v591_v56 = vpop.permute.xlu1 %590 }
  0xb5   : > { %v596_v3 = vpop.permute.xlu0 %595 }
  0xb6   : > { %v601_v5 = vpop.permute.xlu1 %600 }
  0xb9   : > { %v619_v16 = vpop.permute.xlu0 %618 }
  0xba   : > { %v624_v18 = vrot.slane %v619_v16, %v623_v14 }
  0xfd   : > { %v740_v28 = vpop.f32.mrb[0].mxu0 }
  0xfe   : > { %v431_v29 = vadd.f32 %v740_v28, %v334_v27  ;;  %v425_v30 = vpop.f32.mrb[1].mxu0 }
  0xff   : > { %v426_v31 = vadd.f32 %v425_v30, %v329_v25 }
 0x100   : > { %v445_v32 = vmax.f32 %v431_v29, 0.0 }
 0x101   : > { %v444_v34 = vmax.f32 %v426_v31, 0.0  ;;  %v743_v35 = vpop.f32.mrb[2].mxu0 }
 0x102   : > { %v441_v36 = vadd.f32 %v743_v35, %v344_v33  ;;  %v435_v37 = vpop.f32.mrb[3].mxu0 }
 0x103   : > { %v436_v38 = vadd.f32 %v435_v37, %v339_v26  ;;  %v762_v39 = vpack.c.bf16 %v445_v32, %v444_v34 }
 0x104   : > { %v447_v40 = vmax.f32 %v441_v36, 0.0 }
 0x105   : > { %v446_v41 = vmax.f32 %v436_v38, 0.0  ;;  %763 = vmatprep.subr.bf16.mxu1 %v762_v39 }
 0x106   : > { %765 = vmatpush3.bf16.msra.mxu1 %v762_v39 }
 0x107   : > { %v766_v42 = vpack.c.bf16 %v447_v40, %v446_v41 }
 0x109   : > { %767 = vmatprep.subr.bf16.mxu1 %v766_v42 }
 0x10a   : > { %769 = vmatpush3.bf16.msra.mxu1 %v766_v42 }
 0x10d   : > { %753 = vmatmul.mubr.msk.f32.vlgmr.msra.gmra.mrb[0].mxu1 %vm476_vm1, %v449_v43 }
 0x10e   : > { %755 = vmatprep.mubr.msk.f32.mxu1 %vm476_vm1, %v450_v44 }
 0x111   : > { %756 = vmatmul.mubr.msk.f32.gmra.mrb[2].mxu1 %vm476_vm1, %v451_v45 }
 0x1e0   : > { %v754_v50 = vpop.f32.mrb[0].mxu1 }
 0x1e1   : > { %v561_v51 = vadd.f32 %v754_v50, %v464_v47  ;;  %v555_v52 = vpop.f32.mrb[1].mxu1 }
 0x1e2   : > { %v556_v53 = vadd.f32 %v555_v52, %v459_v46 }
 0x1e3   : > { %v575_v55 = vmax.f32 %v561_v51, 0.0 }
 0x1e4   : > { %v574_v57 = vmax.f32 %v556_v53, 0.0  ;;  %v757_v58 = vpop.f32.mrb[2].mxu1 }
 0x1e5   : > { %v604_v59 = vmul.f32 %v591_v56, %v575_v55  ;;  %v571_v60 = vadd.f32 %v757_v58, %v474_v49  ;;  %v565_v61 = vpop.f32.mrb[3].mxu1 }
 0x1e6   : > { %v603_v62 = vmul.f32 %v586_v54, %v574_v57  ;;  %v566_v63 = vadd.f32 %v565_v61, %v469_v48 }
 0x1e7   : > { %v577_v1 = vmax.f32 %v571_v60, 0.0 }
 0x1e8   : > { %v607_v0 = vadd.f32 %v604_v59, %v603_v62  ;;  %v576_v2 = vmax.f32 %v566_v63, 0.0 }
 0x1e9   : > { %v606_v6 = vmul.f32 %v601_v5, %v577_v1 }
 0x1ea   : > { %v605_v4 = vmul.f32 %v596_v3, %v576_v2 }
 0x1ec   : > { %v608_v7 = vadd.f32 %v607_v0, %v605_v4 }
 0x1ee   : > { %v609_v9 = vadd.f32 %v608_v7, %v606_v6 }
 0x1f0   : > { %v610_v10 = vrot.slane %v609_v9, 4 }
 0x1f2   : > { %v611_v12 = vadd.f32 %v610_v10, %v609_v9 }
 0x1f4   : > { %v612_v13 = vrot.slane %v611_v12, 2 }
 0x1f6   : > { %v613_v15 = vadd.f32 %v612_v13, %v611_v12 }
 0x1f8   : > { %v614_v17 = vrot.slane %v613_v15, 1 }
 0x1fa   : > { %v615_v19 = vadd.f32 %v614_v17, %v613_v15 }
 0x1fc   : > { %v625_v20 = vadd.f32 %v624_v18, %v615_v19 }
 0x1fe   : > { %v626_v21 = vmax.f32 %v625_v20, 0.0 }
 0x200   : > { %627 = vst [vmem:[%s315_s23] sm:$0x1] %v626_v21 }
 0x201   : > { %825 = shalt.err (!%p822_p5)
}
 0x202   : > { %s826_s21 = scalar_lea.hbm %s1055_s9, 16  ;;  %s830_s19 = scalar_lea.hbm %s1106_s7, 32 }
 0x203   : > { %p827_p7 = scmp.ne.s32.totalorder %s1055_s9, %s826_s21  ;;  %p831_p12 = scmp.lt.u32.totalorder %s1055_s9, %s1106_s7 }
 0x204   : > { %p832_p13 = scmp.lt.u32.totalorder %s830_s19, %s826_s21  ;;  %p834_p1 = scmp.lt.u32.totalorder %s826_s21, %s1055_s9 }
 0x205   : > { %p828_p10 = pnand %p827_p7, %p959_p6 }
 0x206   : > { %p833_p0 = por %p832_p13, %p831_p12 }
 0x207   : > { %p829_p11 = pneg %p828_p10 }
 0x208   : > { %p835_p2 = por %p834_p1, %p833_p0 }
 0x20a   : > { %p836_p3 = pnand %p835_p2, %p829_p11 }
 0x20c   : > { %839 = shalt.err (!%p836_p3)
}
 0x20d   : > { %770 = dma.vmem_to_hbm [thread:$0]  (%p959_p6), %s1057_s24, 16, %s1055_s9, %s629_s10  }
 0x20e PF: > { %s653_s23 = sand.u32 1, %s862_s26   ;;  %p773_p4 = pnand %p704_p9, %p963_p8 }
 0x20f   : > { %s654_s25 = scalar_lea.sflag [#allocation5], %s653_s23 }
 0x210   : > { %857 = dma.done.wait (!%p773_p4), %s654_s25, 16  }
 0x211   : > { %859 = vsyncadd (!%p773_p4), %s654_s25, 4294967280  ;;  %p19_p5 = scmp.ge.s32.totalorder %s944_s8, 4   ;;  %s1109_s26 = smov %s866_s27 }
 0x212   : > { %s1110_s27 = smov %s870_s28  ;;  %s1111_s28 = smov %s957_s11 }
 0x213   : > { %s1112_s29 = smov %s944_s8  ;;  %21 = sbr.rel (!%p19_p5) target bundleno = 6 (0x6), region = 126 }
 0x21a   :  { %658 = vsyncpa [#allocation5], 1 }
 0x21b   :  { %660 = vsyncpa [#allocation5 + $0x1], 1 }

</bundles_post_ra>
